<compile_context>
chip_gen: v7x
topology: tpu7x:2x2x1
jax: 0.10.0
libtpu: 0.0.40
codegen_flags: <defaults>
</compile_context>

<pallas_src>
import jax
import jax.numpy as jnp
from jax import lax
from jax.experimental import pallas as pl
from jax.experimental.pallas import tpu as pltpu


# --------------------------------------------------------------------------
# Kernel factory (masked / unmasked  x  in-kernel projection / pre-projected)
# --------------------------------------------------------------------------
def _make_kernel(masked: bool, project: bool):
    """Build a kernel for one grid step == (batch b, tgt tile t).

    Refs (in order):
      [lens_ref]  SMEM int32[B]            scalar-prefetched memory_lengths
      src_ref     VMEM cdtype[1, tT, Dq]   query tile (Dq = Dt if project else Ds)
      mem_ref     VMEM cdtype[1, S, Ds]    full memory bank for this batch elem
      [w_ref]     VMEM cdtype[Dt, Ds]      pre-transposed linear_in weight
      out_ref     VMEM odtype[1, tT, S]    attention distribution tile
    """

    def _scores(src_ref, mem_ref, w_ref):
        h_s = mem_ref[0]                                   # (S, Ds)
        q = src_ref[0]                                     # (tT, Dq)
        if project:
            # linear_in(q) = q @ W^T == q @ w_t ; pop directly in compute
            # dtype (MXU accumulates f32 internally and rounds on pop).
            q = jnp.dot(q, w_ref[...], preferred_element_type=h_s.dtype)
        # scores = q_proj @ h_s^T in 'nt' form (contract last dims, no
        # transpose / XLU relayout of the memory-bank tile).
        return lax.dot_general(
            q, h_s,
            dimension_numbers=(((1,), (1,)), ((), ())),
            preferred_element_type=jnp.float32)            # (tT, S), f32

    def _mask(scores, lens_ref):
        # (1, S) iota/compare, broadcast over the tT rows by jnp.where.
        length = lens_ref[pl.program_id(0)]
        col = lax.broadcasted_iota(jnp.int32, (1, scores.shape[-1]), 1)
        return jnp.where(col < length, scores, -jnp.inf)

    def _softmax_store(scores, out_ref):
        # softmax over src_len (last axis), all in f32.
        m = jnp.max(scores, axis=-1, keepdims=True)
        e = jnp.exp(scores - m)
        denom = jnp.sum(e, axis=-1, keepdims=True)
        out_ref[0] = (e * pl.reciprocal(denom, approx=True)).astype(out_ref.dtype)

    if masked and project:
        def kernel(lens_ref, src_ref, mem_ref, w_ref, out_ref):
            _softmax_store(_mask(_scores(src_ref, mem_ref, w_ref), lens_ref),
                           out_ref)
    elif masked:
        def kernel(lens_ref, src_ref, mem_ref, out_ref):
            _softmax_store(_mask(_scores(src_ref, mem_ref, None), lens_ref),
                           out_ref)
    elif project:
        def kernel(src_ref, mem_ref, w_ref, out_ref):
            _softmax_store(_scores(src_ref, mem_ref, w_ref), out_ref)
    else:
        def kernel(src_ref, mem_ref, out_ref):
            _softmax_store(_scores(src_ref, mem_ref, None), out_ref)

    return kernel


# --------------------------------------------------------------------------
# Generation-aware VMEM budgeting & tile-size selection
# --------------------------------------------------------------------------
def _vmem_capacity_bytes():
    """Physical VMEM of the current chip; conservative 64 MiB fallback (v7x)."""
    try:
        info = pltpu.get_tpu_info()
        cap = getattr(info, "vmem_capacity_bytes", None)
        if cap:
            return int(cap)
    except Exception:
        pass
    return 64 * 1024 * 1024


def _choose_tile_t(T, S, q_dim, Ds, cbytes, obytes, budget_bytes):
    """Largest tgt_len tile whose pipelined VMEM footprint fits the budget."""
    if T <= 8:
        return T
    for tT in (1024, 512, 256, 128, 64, 32, 16, 8):
        if tT > T:
            continue
        need = (2 * tT * S * obytes          # double-buffered output tile
                + 2 * tT * q_dim * cbytes    # double-buffered query tile
                + 2 * S * Ds * cbytes        # double-buffered memory-bank tile
                + 2 * q_dim * Ds * cbytes    # weight (also pipelined: 2 bufs)
                + 3 * tT * S * 4             # live f32 temps: scores/where/exp
                + tT * Ds * cbytes)          # projected-query temp
        if need <= budget_bytes:
            return tT
    # Pathologically huge S: minimum sublane-aligned tile.
    return 8


# --------------------------------------------------------------------------
# Wrapper
# --------------------------------------------------------------------------
def target_enc_global_attention(source, memory_bank, linear_in_weight,
                                memory_lengths=None,
                                compute_dtype=jnp.bfloat16,
                                out_dtype=jnp.float32):
    """JAX wrapper replicating TargetEncGlobalAttention.forward
    (attn_type='general', attn_func='softmax').

    source          : f32[B, T, tgt_enc_dim]  (or f32[B, tgt_enc_dim] one-step)
    memory_bank     : f32[B, S, src_enc_dim]
    linear_in_weight: f32[src_enc_dim, tgt_enc_dim]  (nn.Linear weight layout)
    memory_lengths  : int32[B] or None
    compute_dtype   : dtype fed to the MXU (bf16 default; accumulation is f32)
    out_dtype       : dtype of the attention distribution (pass bf16 to halve
                      the dominant output writeback stream)
    returns         : out_dtype[B, T, S]  (or [B, S] if one-step input)
    """
    one_step = source.ndim == 2
    if one_step:
        source = source[:, None, :]

    B, T, Dt = source.shape
    Bm, S, Ds = memory_bank.shape
    assert B == Bm
    assert linear_in_weight.shape == (Ds, Dt)

    masked = memory_lengths is not None
    # Decode path (T == 1): hoist linear_in to one XLA (B,Dt)@(Dt,Ds) matmul
    # so the MXU M dimension is B instead of 1, and drop the weight operand.
    project = T > 1

    mem = memory_bank.astype(compute_dtype)
    w_t = jnp.transpose(linear_in_weight).astype(compute_dtype)   # (Dt, Ds)

    if project:
        q_in = source.astype(compute_dtype)                       # (B, T, Dt)
        q_dim = Dt
    else:
        proj = jnp.dot(source.reshape(B * T, Dt).astype(compute_dtype), w_t,
                       preferred_element_type=jnp.float32)
        q_in = proj.astype(compute_dtype).reshape(B, T, Ds)       # (B, 1, Ds)
        q_dim = Ds

    cbytes = jnp.dtype(compute_dtype).itemsize
    obytes = jnp.dtype(out_dtype).itemsize

    vmem_cap = _vmem_capacity_bytes()
    budget = int(vmem_cap * 0.55)               # headroom for Mosaic scratch
    vmem_limit = min(int(vmem_cap * 0.80), 100 * 1024 * 1024)

    tT = _choose_tile_t(T, S, q_dim, Ds, cbytes, obytes, budget)
    nT = pl.cdiv(T, tT)

    # TODO(synk): for T == 1 also pack multiple batch elements per grid step
    # (one VMEM tile of queries + banks) to amortize per-step overhead.
    # TODO(synk): on v7x consider pltpu.CORE_PARALLEL on the batch axis /
    # pl.Buffered(1) on the memory-bank spec once validated on that target.

    flops = 2 * B * T * S * Ds + (2 * B * T * Dt * Ds if project else 0)
    bytes_accessed = (q_in.size * cbytes + mem.size * cbytes
                      + (w_t.size * cbytes if project else 0)
                      + B * T * S * obytes
                      + (B * 4 if masked else 0))
    cost = pl.CostEstimate(flops=flops,
                           transcendentals=B * T * S,
                           bytes_accessed=bytes_accessed)

    compiler_params = pltpu.CompilerParams(
        dimension_semantics=("parallel", "parallel"),
        vmem_limit_bytes=vmem_limit)

    # index_maps: *_ absorbs the scalar-prefetch ref when present.
    def q_map(b, t, *_):
        return (b, t, 0)

    def mem_map(b, t, *_):
        return (b, 0, 0)

    def w_map(b, t, *_):
        return (0, 0)

    def out_map(b, t, *_):
        return (b, t, 0)

    in_specs = [pl.BlockSpec((1, tT, q_dim), q_map),
                pl.BlockSpec((1, S, Ds), mem_map)]
    operands = [q_in, mem]
    if project:
        in_specs.append(pl.BlockSpec((Dt, Ds), w_map))
        operands.append(w_t)

    if masked:
        lens = memory_lengths.astype(jnp.int32)
        operands = [lens] + operands
        num_scalar_prefetch = 1
    else:
        num_scalar_prefetch = 0

    grid_spec = pltpu.PrefetchScalarGridSpec(
        num_scalar_prefetch=num_scalar_prefetch,
        grid=(B, nT),
        in_specs=in_specs,
        out_specs=pl.BlockSpec((1, tT, S), out_map),
    )

    out = pl.pallas_call(
        _make_kernel(masked, project),
        out_shape=jax.ShapeDtypeStruct((B, T, S), out_dtype),
        grid_spec=grid_spec,
        compiler_params=compiler_params,
        cost_estimate=cost,
    )(*operands)

    if one_step:
        out = out[:, 0, :]
    return out


# --------------------------------------------------------------------------
# Self-test
# --------------------------------------------------------------------------
if __name__ == "__main__":
    batch = 2
    tgt_len = 8
    src_len = 8
    tgt_enc_dim = 32
    src_enc_dim = 32

    key = jax.random.PRNGKey(0)
    k_src, k_mem, k_w = jax.random.split(key, 3)

    source = jax.random.normal(k_src, (batch, tgt_len, tgt_enc_dim),
                               dtype=jnp.float32)
    memory_bank = jax.random.normal(k_mem, (batch, src_len, src_enc_dim),
                                    dtype=jnp.float32)
    # nn.Linear(tgt_enc_dim, src_enc_dim, bias=False) weight: (src_enc_dim, tgt_enc_dim)
    bound = 1.0 / (tgt_enc_dim ** 0.5)
    linear_in_weight = jax.random.uniform(
        k_w, (src_enc_dim, tgt_enc_dim), dtype=jnp.float32,
        minval=-bound, maxval=bound)
    memory_lengths = jnp.array([src_len, src_len - 3], dtype=jnp.int32)

    # Pure-JAX f32 reference.
    h_t_proj = jnp.einsum("btd,sd->bts", source, linear_in_weight)
    scores = jnp.einsum("bts,bks->btk", h_t_proj, memory_bank)
    mask = (jnp.arange(src_len)[None, None, :] <
            memory_lengths[:, None, None])
    ref_masked = jax.nn.softmax(jnp.where(mask, scores, -jnp.inf), axis=-1)
    ref_nomask = jax.nn.softmax(scores, axis=-1)

    # 1) f32 compute path, masked (tight tolerance; approx reciprocal only).
    out_f32 = target_enc_global_attention(
        source, memory_bank, linear_in_weight, memory_lengths,
        compute_dtype=jnp.float32)
    jax.block_until_ready(out_f32)
    assert out_f32.shape == (batch, tgt_len, src_len)
    assert jnp.allclose(out_f32, ref_masked, atol=2e-3, rtol=2e-3)

    # 2) default bf16 compute path, masked (looser tolerance).
    out_bf16 = target_enc_global_attention(
        source, memory_bank, linear_in_weight, memory_lengths)
    jax.block_until_ready(out_bf16)
    assert jnp.allclose(out_bf16, ref_masked, atol=3e-2, rtol=3e-2)

    # 3) no-mask variant.
    out_nomask = target_enc_global_attention(
        source, memory_bank, linear_in_weight, None,
        compute_dtype=jnp.float32)
    jax.block_until_ready(out_nomask)
    assert jnp.allclose(out_nomask, ref_nomask, atol=2e-3, rtol=2e-3)

    # 4) one-step (decode) path: projection hoisted to the wrapper.
    out_1step = target_enc_global_attention(
        source[:, 0, :], memory_bank, linear_in_weight, memory_lengths,
        compute_dtype=jnp.float32)
    jax.block_until_ready(out_1step)
    assert out_1step.shape == (batch, src_len)
    assert jnp.allclose(out_1step, ref_masked[:, 0, :], atol=2e-3, rtol=2e-3)

    # 5) bf16 output writeback path.
    out_bf16_out = target_enc_global_attention(
        source, memory_bank, linear_in_weight, memory_lengths,
        compute_dtype=jnp.float32, out_dtype=jnp.bfloat16)
    jax.block_until_ready(out_bf16_out)
    assert jnp.allclose(out_bf16_out.astype(jnp.float32), ref_masked,
                        atol=1e-2, rtol=1e-2)

    print("KERNEL_OK")
</pallas_src>

<mosaic_0001>
module attributes {stable_mosaic.version = 11 : i64} {
  func.func @kernel(%arg0: i32, %arg1: i32, %arg2: memref<2xi32, #tpu.memory_space<smem>>, %arg3: memref<1x8x32xf32, #tpu.memory_space<vmem>>, %arg4: memref<1x8x32xf32, #tpu.memory_space<vmem>>, %arg5: memref<32x32xf32, #tpu.memory_space<vmem>>, %arg6: memref<1x8x8xf32, #tpu.memory_space<vmem>>) attributes {dimension_semantics = [#tpu.dimension_semantics<parallel>, #tpu.dimension_semantics<parallel>], iteration_bounds = array<i64: 2, 1>, scalar_prefetch = 1 : i64, scratch_operands = 0 : i64, tpu.core_type = #tpu.core_type<tc>, window_params = [{transform_indices = @transform_0, window_bounds = array<i64: 1, 8, 32>}, {transform_indices = @transform_1, window_bounds = array<i64: 1, 8, 32>}, {pipeline_mode = #tpu.pipeline_mode<synchronous>, transform_indices = @transform_2, window_bounds = array<i64: 32, 32>}, {transform_indices = @transform_3, window_bounds = array<i64: 1, 8, 8>}]} {
    %c0 = arith.constant 0 : index
    %c0_0 = arith.constant 0 : index
    %c0_1 = arith.constant 0 : index
    %0 = vector.load %arg4[%c0, %c0_0, %c0_1] : memref<1x8x32xf32, #tpu.memory_space<vmem>>, vector<1x8x32xf32>
    %1 = vector.shape_cast %0 : vector<1x8x32xf32> to vector<8x32xf32>
    %c0_2 = arith.constant 0 : index
    %c0_3 = arith.constant 0 : index
    %c0_4 = arith.constant 0 : index
    %2 = vector.load %arg3[%c0_2, %c0_3, %c0_4] : memref<1x8x32xf32, #tpu.memory_space<vmem>>, vector<1x8x32xf32>
    %3 = vector.shape_cast %2 : vector<1x8x32xf32> to vector<8x32xf32>
    %c0_5 = arith.constant 0 : index
    %c0_6 = arith.constant 0 : index
    %4 = vector.load %arg5[%c0_5, %c0_6] : memref<32x32xf32, #tpu.memory_space<vmem>>, vector<32x32xf32>
    %cst = arith.constant dense<0.000000e+00> : vector<8x32xf32>
    %5 = tpu.matmul %3, %4, %cst {dimension_numbers = #tpu.dot_dimension_numbers<[1], [0], [0], [1], [0, 0, 1, 1], [], []>} : vector<8x32xf32>, vector<32x32xf32>, vector<8x32xf32> -> vector<8x32xf32>
    %cst_7 = arith.constant dense<0.000000e+00> : vector<8x8xf32>
    %6 = tpu.matmul %5, %1, %cst_7 {dimension_numbers = #tpu.dot_dimension_numbers<[1], [1], [0], [0], [0, 0, 1, 0], [], []>} : vector<8x32xf32>, vector<8x32xf32>, vector<8x8xf32> -> vector<8x8xf32>
    %7 = arith.index_cast %arg0 : i32 to index
    %8 = memref.load %arg2[%7] : memref<2xi32, #tpu.memory_space<smem>>
    %9 = tpu.iota {dimensions = array<i32: 1>} : vector<1x8xi32>
    %10 = vector.broadcast %8 : i32 to vector<1x8xi32>
    %11 = arith.cmpi slt, %9, %10 : vector<1x8xi32>
    %cst_8 = arith.constant 0xFF800000 : f32
    %12 = vector.shape_cast %11 : vector<1x8xi1> to vector<1x8xi1>
    %13 = vector.broadcast %12 : vector<1x8xi1> to vector<8x8xi1>
    %14 = vector.broadcast %cst_8 : f32 to vector<8x8xf32>
    %15 = arith.select %13, %6, %14 : vector<8x8xi1>, vector<8x8xf32>
    %cst_9 = arith.constant dense<0xFF800000> : vector<8xf32>
    %16 = vector.multi_reduction <maximumf>, %15, %cst_9 [1] : vector<8x8xf32> to vector<8xf32>
    %17 = vector.shape_cast %16 : vector<8xf32> to vector<8x1xf32>
    %18 = vector.broadcast %17 : vector<8x1xf32> to vector<8x8xf32>
    %19 = arith.subf %15, %18 : vector<8x8xf32>
    %20 = math.exp %19 : vector<8x8xf32>
    %cst_10 = arith.constant dense<0.000000e+00> : vector<8xf32>
    %21 = vector.multi_reduction <add>, %20, %cst_10 [1] : vector<8x8xf32> to vector<8xf32>
    %22 = vector.shape_cast %21 : vector<8xf32> to vector<8x1xf32>
    %23 = tpu.reciprocal %22 {approx = true} : vector<8x1xf32> -> vector<8x1xf32>
    %24 = vector.broadcast %23 : vector<8x1xf32> to vector<8x8xf32>
    %25 = arith.mulf %20, %24 : vector<8x8xf32>
    %c0_11 = arith.constant 0 : index
    %c0_12 = arith.constant 0 : index
    %c0_13 = arith.constant 0 : index
    %26 = vector.load %arg6[%c0_11, %c0_12, %c0_13] : memref<1x8x8xf32, #tpu.memory_space<vmem>>, vector<1x8x8xf32>
    %27 = vector.shape_cast %26 : vector<1x8x8xf32> to vector<8x8xf32>
    %28 = vector.shape_cast %25 : vector<8x8xf32> to vector<1x8x8xf32>
    tpu.vector_store %arg6[%c0_11, %c0_12, %c0_13], %28 {strides = array<i32>} : memref<1x8x8xf32, #tpu.memory_space<vmem>>, vector<1x8x8xf32>,
    return
  }
  func.func @transform_0(%arg0: i32, %arg1: i32, %arg2: memref<2xi32, #tpu.memory_space<smem>>) -> (i32, i32, i32) {
    %c0_i32 = arith.constant 0 : i32
    %c0_i32_0 = arith.constant 0 : i32
    return %arg0, %arg1, %c0_i32 : i32, i32, i32
  }
  func.func @transform_1(%arg0: i32, %arg1: i32, %arg2: memref<2xi32, #tpu.memory_space<smem>>) -> (i32, i32, i32) {
    %c0_i32 = arith.constant 0 : i32
    %c0_i32_0 = arith.constant 0 : i32
    %c0_i32_1 = arith.constant 0 : i32
    return %arg0, %c0_i32, %c0_i32_0 : i32, i32, i32
  }
  func.func @transform_2(%arg0: i32, %arg1: i32, %arg2: memref<2xi32, #tpu.memory_space<smem>>) -> (i32, i32) {
    %c0_i32 = arith.constant 0 : i32
    %c0_i32_0 = arith.constant 0 : i32
    %c0_i32_1 = arith.constant 0 : i32
    return %c0_i32, %c0_i32_0 : i32, i32
  }
  func.func @transform_3(%arg0: i32, %arg1: i32, %arg2: memref<2xi32, #tpu.memory_space<smem>>) -> (i32, i32, i32) {
    %c0_i32 = arith.constant 0 : i32
    %c0_i32_0 = arith.constant 0 : i32
    return %arg0, %arg1, %c0_i32 : i32, i32, i32
  }
}

</mosaic_0001>

<bundles_post_ra>
// kernel: tpu_custom_call.1
= control target key start
LH: loop header
LB: loop body
LE: loop exit
PB: predicated region body
PF: predicated region fallthrough
CT: control target
= control target key end

     0   :  { %s1195_s0 = inlined_call_operand.hbm [shape: s32[2], index: 0, kind: input, shape index: {}]   ;;  %s1196_s1 = inlined_call_operand.hbm [shape: f32[2,8,32], index: 1, kind: input, shape index: {}]   ;;  %s1197_s2 = inlined_call_operand.hbm [shape: f32[2,8,32], index: 2, kind: input, shape index: {}]   ;;  %s1198_s3 = inlined_call_operand.hbm [shape: f32[32,32], index: 3, kind: input, shape index: {}]   ;;  %s1199_s4 = inlined_call_operand.hbm [shape: f32[2,8,8], index: 4, kind: output, shape index: {}]  }
   0x1   :  { %1205 = sst [smem:[#allocation17_spill]] %s1198_s3  ;;  %s701_s17 = scalar_lea.hbm %s1195_s0, 16 }
   0x2   :  { %p702_p0 = scmp.ne.s32.totalorder %s1195_s0, %s701_s17  ;;  %p705_p1 = scmp.lt.u32.totalorder %s701_s17, %s1195_s0 }
   0x4   :  { %p707_p2 = pnand %p705_p1, %p702_p0 }
   0x6   :  { %710 = shalt.err (!%p707_p2)  }
   0x7   :  { %s893_s22 = smov [#allocation3]  }
   0x8   :  { %10 = dma.hbm_to_smem %s1195_s0, 16, %s893_s22, [#allocation2] }
   0x9   :  { %851 = dma.done.wait [#allocation2], 16 }
   0xa   :  { %852 = vsyncadd [#allocation2], 4294967280 }
   0xb   :  { %12 = sfence }
   0xc   :  { %13 = vsyncpa [#allocation5], 0 }
   0xd   :  { %15 = vsyncpa [#allocation5 + $0x1], 0 }
   0xe   :  { %16 = vsyncpa [#allocation8], 0 }
   0xf   :  { %18 = vsyncpa [#allocation8 + $0x1], 0 }
  0x10   :  { %19 = vsyncpa [#allocation6], 0 }
  0x11   :  { %21 = vsyncpa [#allocation6 + $0x1], 0  ;;  %s940_s25 = smov 0   ;;  %s942_s26 = smov 0  }
  0x12   :  { %s944_s27 = smov 0   ;;  %s946_s28 = smov 0  }
  0x13   :  { %s948_s29 = smov 0   ;;  %s950_s0 = smov 0  }
  0x14 LB: > { %s971_s30 = sadd.s32 4294967295, %s891_s0   ;;  %s564_s5 = sadd.s32 4294967294, %s891_s0   ;;  %s891_s0 = sphi %s950_s0, %s27_s0   ;;  %s887_s29 = sphi %s948_s29, %s1228_s29   ;;  %s883_s28 = sphi %s946_s28, %s1227_s28   ;;  %s879_s27 = sphi %s944_s27, %s1226_s27   ;;  %s875_s26 = sphi %s942_s26, %s1225_s26   ;;  %s871_s25 = sphi %s940_s25, %s1224_s25  }
  0x15   : > { %p61_p3 = scmp.ne.s32.totalorder %s875_s26, %s871_s25  ;;  %p1200_p4 = scmp.eq.s32.totalorder %s971_s30, 0 }
  0x16   : > { %p140_p6 = scmp.eq.s32.totalorder %s564_s5, 1  ;;  %p565_p8 = scmp.ge.s32.totalorder %s891_s0, 1 }
  0x17   : > { %p980_p7 = por %p1200_p4, %p61_p3  ;;  %p147_p10 = scmp.lt.s32.totalorder %s891_s0, 3 }
  0x18   : > { %p985_p9 = por %p140_p6, %p61_p3  ;;  %s894_s9 = smov [#allocation9]  }
  0x19   : > { %s1206_s6 = scalar_select %p980_p7, 1, 0 }
  0x1a   : > { %s1207_s7 = scalar_select %p985_p9, 1, 0 }
  0x1b   : > { %p990_p11 = pnand %p565_p8, %p147_p10  ;;  %s159_s10 = sshll.u32 %s894_s9, 4  ;;  %s160_s10 = int_to_ptr.vmem [resolvable:$true] %s159_s10 }
  0x1c   : > { %s39_s12 = sadd.s32 1, %s887_s29  ;;  %s1210_s3 = sld [smem:[#allocation17_spill]] }
  0x1d   : > { %s1208_s8 = scalar_select %p990_p11, 1, 0 }
  0x1e   : > { %p623_p12 = pneg %p990_p11 }
  0x20   : > { %p999_p0 = pnand %p623_p12, %p1200_p4 }
  0x22   : > { %s711_s15 = scalar_lea.hbm %s1210_s3, 512  ;;  %p713_p2 = pneg %p999_p0 }
  0x23   : > { %p712_p1 = scmp.ne.s32.totalorder %s1210_s3, %s711_s15  ;;  %p718_p8 = scmp.lt.u32.totalorder %s711_s15, %s1210_s3 }
  0x25   : > { %p714_p3 = pnand %p713_p2, %p712_p1 }
  0x27   : > { %p715_p6 = pneg %p714_p3 }
  0x29   : > { %p720_p10 = pnand %p718_p8, %p715_p6 }
  0x2b   : > { %723 = shalt.err (!%p720_p10)
}
  0x2c   : > { %s724_s20 = scalar_lea.vmem %s160_s10, 512  ;;  %p732_p5 = scmp.lt.s32.totalorder %s160_s10, %s160_s10 }
  0x2d   : > { %p725_p12 = scmp.ne.s32.totalorder %s160_s10, %s724_s20  ;;  %p733_p9 = scmp.lt.s32.totalorder %s724_s20, %s724_s20 }
  0x2f   : > { %p727_p13 = pnand %p725_p12, %p713_p2  ;;  %p734_p7 = por %p733_p9, %p732_p5 }
  0x31   : > { %p728_p4 = pneg %p727_p13 }
  0x33   : > { %p735_p11 = pnand %p734_p7, %p728_p4 }
  0x35   : > { %738 = shalt.err (!%p735_p11)
}
  0x36   : > { %s895_s21 = smov 128   ;;  %s896_s22 = smov 8  }
  0x37   : > { %626 = dma.hbm_to_vmem [thread:$0]  (!%p999_p0), %s1210_s3, 512, %s160_s10, [#allocation8], %s895_s21, %s895_s21, %s896_s22  }
  0x38   : > { %p41_p4 = scmp.ge.s32.totalorder %s39_s12, 2  ;;  %s48_s5 = sadd.s32 1, %s879_s27 }
  0x39   : > { %p55_p5 = scmp.ne.s32.totalorder %s879_s27, %s875_s26  ;;  %p56_p7 = scmp.eq.s32.totalorder %s891_s0, 0 }
  0x3a   : > { %s1230_s12 = smov (%p41_p4, %s39_s12), 0  ;;  %p1213_p11 = scmp.eq.s32.totalorder %s971_s30, 1 }
  0x3b   : > { %1211 = sst [smem:[#allocation16_spill]] %s1230_s12  ;;  %p1026_p9 = por %p56_p7, %p55_p5 }
  0x3c   : > { %p1032_p13 = por %p1213_p11, %p55_p5  ;;  %s43_s13 = ssub.s32 %s887_s29, %s1230_s12 }
  0x3d   : > { %p639_p0 = scmp.lt.s32.totalorder %s891_s0, 2  ;;  %p46_p1 = scmp.eq.s32.totalorder %s43_s13, 0 }
  0x3e   : > { %s1214_s11 = scalar_select %p1032_p13, 1, 0 }
  0x3f   : > { %s173_s10 = sand.u32 1, %s879_s27   ;;  %s569_s16 = sshll.u32 %s887_s29, 7 }
  0x40   : > { %s1040_s14 = sshll.u32 %s173_s10, 3  ;;  %s1049_s19 = scalar_lea.hbm %s1196_s1, %s569_s16 }
  0x41   : > { %s1043_s15 = scalar_select %p46_p1, %s879_s27, %s48_s5  }
  0x42   : > { %s177_s20 = scalar_lea.vmem [#allocation4], %s1040_s14  ;;  %p1056_p2 = pnand %p639_p0, %p1026_p9 }
  0x43   : > { %s185_s21 = sshll.u32 %s177_s20, 4  ;;  %s1063_s5 = scalar_lea.hbm %s1197_s2, %s569_s16  ;;  %s1052_s21 = int_to_ptr.vmem [resolvable:$true] %s185_s21 }
  0x44   : > { %s192_s13 = sand.u32 1, %s891_s0   ;;  %s174_s17 = scalar_lea.sflag [#allocation5], %s173_s10 }
  0x45   : > { %s739_s18 = scalar_lea.hbm %s1049_s19, 128  ;;  %p741_p6 = pneg %p1056_p2 }
  0x46   : > { %p740_p3 = scmp.ne.s32.totalorder %s1049_s19, %s739_s18  ;;  %s744_s3 = scalar_lea.hbm %s1196_s1, 256 }
  0x47   : > { %p745_p12 = scmp.lt.u32.totalorder %s1049_s19, %s1196_s1  ;;  %p746_p4 = scmp.lt.u32.totalorder %s744_s3, %s739_s18 }
  0x48   : > { %p742_p8 = pnand %p741_p6, %p740_p3  ;;  %p748_p7 = scmp.lt.u32.totalorder %s739_s18, %s1049_s19 }
  0x49   : > { %p747_p5 = por %p746_p4, %p745_p12 }
  0x4a   : > { %p743_p10 = pneg %p742_p8 }
  0x4b   : > { %p749_p9 = por %p748_p7, %p747_p5 }
  0x4d   : > { %p750_p11 = pnand %p749_p9, %p743_p10 }
  0x4f   : > { %753 = shalt.err (!%p750_p11)
}
  0x50   : > { %s754_s10 = scalar_lea.vmem %s1052_s21, 128  ;;  %s897_s16 = smov [#allocation4]  }
  0x51   : > { %p755_p0 = scmp.ne.s32.totalorder %s1052_s21, %s754_s10  ;;  %s759_s24 = sshll.u32 %s897_s16, 4  ;;  %s760_s24 = int_to_ptr.vmem [resolvable:$false] %s759_s24 }
  0x52   : > { %s761_s12 = scalar_lea.vmem %s760_s24, 256  ;;  %p762_p8 = scmp.lt.s32.totalorder %s1052_s21, %s760_s24 }
  0x53   : > { %p757_p1 = pnand %p755_p0, %p741_p6  ;;  %p763_p12 = scmp.lt.s32.totalorder %s761_s12, %s754_s10 }
  0x55   : > { %p758_p3 = pneg %p757_p1  ;;  %p764_p4 = por %p763_p12, %p762_p8 }
  0x57   : > { %p765_p5 = pnand %p764_p4, %p758_p3 }
  0x59   : > { %768 = shalt.err (!%p765_p5)
}
  0x5a   : > { %630 = dma.hbm_to_vmem [thread:$0]  (!%p1056_p2), %s1049_s19, 128, %s1052_s21, %s174_s17  }
  0x5b   : > { %s196_s3 = scalar_lea.vmem [#allocation7], %s1040_s14  ;;  %s193_s9 = scalar_lea.sflag [#allocation8], %s192_s13 }
  0x5c   : > { %s203_s18 = sshll.u32 %s196_s3, 4  ;;  %s769_s20 = scalar_lea.hbm %s1063_s5, 128  ;;  %s204_s18 = int_to_ptr.vmem [resolvable:$true] %s203_s18 }
  0x5d   : > { %p770_p10 = scmp.ne.s32.totalorder %s1063_s5, %s769_s20  ;;  %s774_s16 = scalar_lea.hbm %s1197_s2, 256 }
  0x5e   : > { %p775_p11 = scmp.lt.u32.totalorder %s1063_s5, %s1197_s2  ;;  %p776_p0 = scmp.lt.u32.totalorder %s774_s16, %s769_s20 }
  0x5f   : > { %p772_p7 = pnand %p770_p10, %p741_p6  ;;  %p778_p3 = scmp.lt.u32.totalorder %s769_s20, %s1063_s5 }
  0x60   : > { %p777_p1 = por %p776_p0, %p775_p11 }
  0x61   : > { %p773_p9 = pneg %p772_p7 }
  0x62   : > { %p779_p8 = por %p778_p3, %p777_p1 }
  0x64   : > { %p780_p12 = pnand %p779_p8, %p773_p9 }
  0x66   : > { %783 = shalt.err (!%p780_p12)
}
  0x67   : > { %s784_s14 = scalar_lea.vmem %s204_s18, 128  ;;  %s898_s19 = smov [#allocation7]  }
  0x68   : > { %p785_p4 = scmp.ne.s32.totalorder %s204_s18, %s784_s14  ;;  %s789_s21 = sshll.u32 %s898_s19, 4  ;;  %s790_s21 = int_to_ptr.vmem [resolvable:$false] %s789_s21 }
  0x69   : > { %s791_s13 = scalar_lea.vmem %s790_s21, 256  ;;  %p792_p7 = scmp.lt.s32.totalorder %s204_s18, %s790_s21 }
  0x6a   : > { %p787_p5 = pnand %p785_p4, %p741_p6  ;;  %p793_p13 = scmp.lt.s32.totalorder %s791_s13, %s784_s14 }
  0x6c   : > { %p788_p10 = pneg %p787_p5  ;;  %p794_p0 = por %p793_p13, %p792_p7 }
  0x6e   : > { %p795_p11 = pnand %p794_p0, %p788_p10 }
  0x70   : > { %798 = shalt.err (!%p795_p11)
}
  0x71   : > { %633 = dma.hbm_to_vmem [thread:$0]  (!%p1056_p2), %s1063_s5, 128, %s204_s18, %s193_s9  }
  0x72   : > { %p1216_p9 = scmp.ne.s32.totalorder %s1208_s8, 0 }
  0x73   : > { %s1116_s17 = sand.u32 (!%p1216_p9), 1, %s875_s26   ;;  %p1217_p13 = scmp.ne.s32.totalorder (!%p1216_p9), %s1206_s6, 0 }
  0x74   : > { %212 = sbr.rel (%p1216_p9) target bundleno = 893 (0x37d), region = 32  ;;  %s1119_s3 = sshll.u32 (!%p1216_p9), %s1116_s17, 3 }
  0x75   : > { %s215_s20 = scalar_lea.sflag (!%p1216_p9), [#allocation5], %s1116_s17  ;;  %s218_s23 = scalar_lea.vmem (!%p1216_p9), [#allocation4], %s1119_s3 }
  0x7b   : > { %854 = dma.done.wait (%p1217_p13), %s215_s20, 128  }
  0x7c   : > { %856 = vsyncadd (%p1217_p13), %s215_s20, 4294967168  ;;  %s223_s8 = sand.u32 1, %s971_s30   ;;  %s227_s5 = scalar_lea.vmem [#allocation7], %s1119_s3 }
  0x7d   : > { %s224_s22 = scalar_lea.sflag [#allocation8], %s223_s8 }
  0x7e   : > { %858 = dma.done.wait (%p1217_p13), %s224_s22, 128  }
  0x7f   : > { %860 = vsyncadd (%p1217_p13), %s224_s22, 4294967168  ;;  %p1218_p2 = scmp.eq.s32.totalorder %s971_s30, 0 }
  0x81   : > { %862 = dma.done.wait (%p1218_p2), [#allocation8], 512   ;;  %p1219_p6 = pmov %p1218_p2 }
  0x82   : > { %v899_v0 = vmov 0.0|0.0   ;;  %vm900_vm0 = vmmov 0   ;;  %v901_v1 = vmov 0.0   ;;  %v261_v2 = vld [vmem:[#allocation9] sm:$0xff]  ;;  %v262_v3 = vld [vmem:[#allocation9 + $0x8] sm:$0xff]  ;;  %v263_v4 = vld [vmem:[#allocation9 + $0x10] sm:$0xff]  ;;  %v416_v12 = vlaneseq }
  0x83   : > { %864 = vsyncadd (%p1219_p6), [#allocation8], 4294966784  ;;  %607 = vmatprep.subr.bf16.mxu0 %v899_v0  ;;  %599 = vmatprep.mubr.msk.f32.mxu0 %vm900_vm0, %v901_v1  ;;  %v608_v5 = vpack.c.bf16 %v262_v3, %v261_v2  ;;  %v264_v6 = vld [vmem:[#allocation9 + $0x18] sm:$0xff]  ;;  %vm265_vm1 = vcmask 261120   ;;  %v260_v9 = vld [vmem:[%s218_s23] sm:$0xff]  ;;  %s415_s30 = sld [smem:[#allocation3 + %s883_s28]] }
  0x84   : > { %602 = vmatprep.subr.mxu1 %v901_v1  ;;  %604 = vmatprep.mubr.msk.f32.mxu1 %vm900_vm0, %v901_v1  ;;  %v259_v7 = vld [vmem:[%s227_s5] sm:$0xff]  ;;  %v611_v8 = vpack.c.bf16 %v264_v6, %v263_v4  ;;  %v417_v13 = vand.u32 127, %v416_v12  ;;  %vm423_vm3 = vcmask 64512   ;;  %s581_s6 = sshll.u32 %s883_s28, 7  ;;  %s258_s18 = scalar_lea.vmem [#allocation10], %s1119_s3 }
  0x85   : > { %603 = vmatpush3.xpose.msk.msra.mxu1 %vm265_vm1, %v259_v7  ;;  %609 = vmatpush3.bf16.msra.mxu0 %v608_v5  ;;  %s451_s9 = sshll.u32 %s258_s18, 4  ;;  %s1145_s24 = scalar_lea.hbm %s1199_s4, %s581_s6  ;;  %s1147_s9 = int_to_ptr.vmem [resolvable:$true] %s451_s9 }
  0x86   : > { %610 = vmatprep.subr.bf16.mxu0 %v899_v0  ;;  %s437_s12 = scalar_lea.sflag [#allocation6], %s1116_s17  ;;  %s799_s14 = scalar_lea.vmem %s1147_s9, 128 }
  0x87   : > { %p800_p1 = scmp.ne.s32.totalorder %s1147_s9, %s799_s14  ;;  %p1220_p3 = scmp.ne.s32.totalorder %s1214_s11, 0 }
  0x88   : > { %s902_s28 = smov [#allocation10]  }
  0x89   : > { %612 = vmatpush3.bf16.msra.mxu0 %v611_v8  ;;  %v418_v14 = vstv %s415_s30  ;;  %p801_p8 = pnand %p800_p1, %p1220_p3  ;;  %s803_s19 = sshll.u32 %s902_s28, 4  ;;  %s804_s19 = int_to_ptr.vmem [resolvable:$false] %s803_s19 }
  0x8a   : > { %vm419_vm2 = vcmp.lt.s32.totalorder %v417_v13, %v418_v14  ;;  %s805_s21 = scalar_lea.vmem %s804_s19, 256  ;;  %p806_p4 = scmp.lt.s32.totalorder %s1147_s9, %s804_s19 }
  0x8b   : > { %p802_p12 = pneg %p801_p8  ;;  %p807_p5 = scmp.lt.s32.totalorder %s805_s21, %s799_s14 }
  0x8c   : > { %600 = vmatmul.mubr.msk.f32.vlgmr.msra.gmra.mrb[0].mxu0 %vm265_vm1, %v260_v9 }
  0x8d   : > { %p808_p10 = por %p807_p5, %p806_p4 }
  0x8f   : > { %p809_p7 = pnand %p808_p10, %p802_p12 }
 0x15f   : > { %v335_v10 = vpop.f32.mrb[0].mxu0 }
 0x160   : > { %v601_v11 = vpop.f32.mrb[1].mxu0  ;;  %605 = vmatmul.mubr.msk.f32.vlgmr.msra.gmra.mrb[0].mxu1 %vm265_vm1, %v335_v10 }
 0x233   : > { %v411_v15 = vpop.f32.mrb[0].mxu1 }
 0x234   : > { %v422_v16 = vsel %vm419_vm2, %v411_v15, -inf  ;;  %v606_v17 = vpop.f32.mrb[1].mxu1 }
 0x235   : > { %v424_v18 = vsel %vm423_vm3, %v422_v16, -inf }
 0x236   : > { %425 = vmax.xlane.f32.xlu0 %v424_v18 }
 0x2c3   : > { %v426_v19 = vpop.xlane.xlu0 %425 }
 0x2c4   : > { %v427_v20 = vsub.f32 %v422_v16, %v426_v19 }
 0x2c6   : > { %v428_v21 = vmul.f32 1.442695, %v427_v20 }
 0x2c8   : > { %697 = vpow2.f32 %v428_v21 }
 0x2d2   : > { %v698_v22 = vpop.eup %697 }
 0x2d3   : > { %v430_v23 = vsel %vm423_vm3, %v698_v22, 0.0 }
 0x2d4   : > { %431 = vadd.xlane.f32.xlu0 %v430_v23 }
 0x361   : > { %v432_v24 = vpop.xlane.xlu0 %431 }
 0x362   : > { %699 = vrcp.f32 %v432_v24 }
 0x36c   : > { %v700_v25 = vpop.eup %699 }
 0x36d   : > { %v434_v26 = vmul.f32 %v700_v25, %v698_v22 }
 0x36f   : > { %435 = vst.msk [vmem:[%s258_s18] sm:$0xff] %vm423_vm3, %v434_v26 }
 0x370   : > { %812 = shalt.err (!%p809_p7)
}
 0x371   : > { %s813_s13 = scalar_lea.hbm %s1145_s24, 128  ;;  %s817_s20 = scalar_lea.hbm %s1199_s4, 256 }
 0x372   : > { %p814_p0 = scmp.ne.s32.totalorder %s1145_s24, %s813_s13  ;;  %p818_p13 = scmp.lt.u32.totalorder %s1145_s24, %s1199_s4 }
 0x373   : > { %p819_p2 = scmp.lt.u32.totalorder %s817_s20, %s813_s13  ;;  %p821_p1 = scmp.lt.u32.totalorder %s813_s13, %s1145_s24 }
 0x374   : > { %p815_p11 = pnand %p814_p0, %p1220_p3 }
 0x375   : > { %p820_p6 = por %p819_p2, %p818_p13 }
 0x376   : > { %p816_p9 = pneg %p815_p11 }
 0x377   : > { %p822_p8 = por %p821_p1, %p820_p6 }
 0x379   : > { %p823_p12 = pnand %p822_p8, %p816_p9 }
 0x37b   : > { %826 = shalt.err (!%p823_p12)
}
 0x37c   : > { %621 = dma.vmem_to_hbm [thread:$0]  (%p1220_p3), %s1147_s9, 128, %s1145_s24, %s437_s12  }
 0x37d PF: > { %s463_s22 = sand.u32 1, %s871_s25   ;;  %p1221_p4 = scmp.ne.s32.totalorder %s1207_s7, 0 }
 0x37e   : > { %p1222_p5 = scmp.ge.s32.totalorder %s891_s0, 2  ;;  %s464_s5 = scalar_lea.sflag [#allocation6], %s463_s22 }
 0x380   : > { %p635_p10 = pnand %p1222_p5, %p1221_p4 }
 0x382   : > { %866 = dma.done.wait (!%p635_p10), %s464_s5, 128  }
 0x383   : > { %868 = vsyncadd (!%p635_p10), %s464_s5, 4294967168  ;;  %s27_s0 = sadd.s32 1, %s891_s0   ;;  %s1223_s11 = sld [smem:[#allocation16_spill]] }
 0x384   : > { %p24_p7 = scmp.ge.s32.totalorder %s27_s0, 4   ;;  %s1224_s25 = smov %s875_s26 }
 0x385   : > { %s1225_s26 = smov %s879_s27  ;;  %s1226_s27 = smov %s1043_s15 }
 0x386   : > { %s1227_s28 = smov %s887_s29  ;;  %26 = sbr.rel (!%p24_p7) target bundleno = 20 (0x14), region = 94 }
 0x389   : > { %s1228_s29 = smov %s1223_s11 }
 0x38d   :  { %469 = vsyncpa [#allocation5], 1 }
 0x38e   :  { %471 = vsyncpa [#allocation5 + $0x1], 1 }
 0x38f   :  { %472 = vsyncpa [#allocation8], 1 }
 0x390   :  { %474 = vsyncpa [#allocation8 + $0x1], 1 }
 0x391   :  { %475 = vsyncpa [#allocation6], 1 }
 0x392   :  { %477 = vsyncpa [#allocation6 + $0x1], 1 }

</bundles_post_ra>
